<compile_context>
chip_gen: v5e
topology: v5e:2x2
jax: 0.10.0
libtpu: 0.0.40
codegen_flags: <defaults>
</compile_context>

<pallas_src>
import jax
import jax.numpy as jnp
from jax.experimental import pallas as pl
from jax.experimental.pallas import tpu as pltpu


def _round_up(v, m):
    return (v + m - 1) // m * m


# ---------------------------------------------------------------------------
# Scalar fast path: out = x * w + b   (D == 1, O == 1)
# ---------------------------------------------------------------------------
def _scalar_linear_kernel(x_ref, w_ref, b_ref, o_ref):
    # x_ref / o_ref: (tr, 128) VMEM tiles.   w_ref / b_ref: (1,) SMEM scalars.
    o_ref[...] = x_ref[...] * w_ref[0] + b_ref[0]


def _scalar_linear(x, weight, bias, *, block_rows=512):
    n = x.shape[0]
    lanes, sublanes = 128, 8
    padded = _round_up(n, lanes * sublanes)          # full 8x128 vregs
    rows = padded // lanes
    xr = jnp.pad(x.reshape(-1), (0, padded - n)).reshape(rows, lanes)
    tr = min(block_rows, rows)                       # rows is a multiple of 8

    out = pl.pallas_call(
        _scalar_linear_kernel,
        out_shape=jax.ShapeDtypeStruct((rows, lanes), x.dtype),
        grid_spec=pltpu.PrefetchScalarGridSpec(
            num_scalar_prefetch=0,
            grid=(pl.cdiv(rows, tr),),
            in_specs=[
                pl.BlockSpec((tr, lanes), lambda i: (i, 0)),
                pl.BlockSpec(memory_space=pltpu.MemorySpace.SMEM),
                pl.BlockSpec(memory_space=pltpu.MemorySpace.SMEM),
            ],
            out_specs=pl.BlockSpec((tr, lanes), lambda i: (i, 0)),
        ),
        compiler_params=pltpu.CompilerParams(
            dimension_semantics=("parallel",)),
    )(xr, weight.reshape(1), bias.reshape(1))
    return out.reshape(-1)[:n].reshape(n, 1)


# ---------------------------------------------------------------------------
# D == 1, O > 1: VPU outer-product broadcast (no MXU, no 128x K padding)
# ---------------------------------------------------------------------------
def _d1_linear_kernel(x_ref, w_ref, b_ref, o_ref):
    # x_ref: (tm, 1)   w_ref / b_ref: (1, tn)   o_ref: (tm, tn)
    o_ref[...] = x_ref[...] * w_ref[...] + b_ref[...]


def _d1_linear(x, weight, bias, *, tm=512, tn=512):
    n = x.shape[0]
    o = weight.shape[0]
    tm_ = min(tm, _round_up(n, 8))
    tn_ = min(tn, _round_up(o, 128))
    return pl.pallas_call(
        _d1_linear_kernel,
        out_shape=jax.ShapeDtypeStruct((n, o), x.dtype),
        grid_spec=pltpu.PrefetchScalarGridSpec(
            num_scalar_prefetch=0,
            grid=(pl.cdiv(n, tm_), pl.cdiv(o, tn_)),
            in_specs=[
                pl.BlockSpec((tm_, 1), lambda i, j: (i, 0)),
                pl.BlockSpec((1, tn_), lambda i, j: (0, j)),
                pl.BlockSpec((1, tn_), lambda i, j: (0, j)),
            ],
            out_specs=pl.BlockSpec((tm_, tn_), lambda i, j: (i, j)),
        ),
        compiler_params=pltpu.CompilerParams(
            dimension_semantics=("parallel", "parallel")),
    )(x, weight.reshape(1, o), bias.reshape(1, o))


# ---------------------------------------------------------------------------
# O == 1, D > 1: broadcast-multiply + lane reduce (VPU/XLU, no MXU)
# ---------------------------------------------------------------------------
def _o1_linear_kernel(x_ref, w_ref, b_ref, o_ref):
    # x_ref: (tm, tk)   w_ref: (1, tk)   b_ref: (1,) SMEM   o_ref: (tm, 1)
    part = jnp.sum(x_ref[...] * w_ref[...], axis=-1, keepdims=True)

    @pl.when(pl.program_id(1) == 0)
    def _():
        o_ref[...] = part + b_ref[0]

    @pl.when(pl.program_id(1) > 0)
    def _():
        o_ref[...] += part


def _o1_linear(x, weight, bias, *, tm=512, tk=2048):
    n, d = x.shape
    tm_ = min(tm, _round_up(n, 8))
    tk_ = min(tk, _round_up(d, 128))
    dp = _round_up(d, tk_)
    # K tail must be zero so boundary garbage cannot leak into valid outputs.
    xk = x if dp == d else jnp.pad(x, ((0, 0), (0, dp - d)))
    wk = weight.reshape(1, d)
    wk = wk if dp == d else jnp.pad(wk, ((0, 0), (0, dp - d)))

    return pl.pallas_call(
        _o1_linear_kernel,
        out_shape=jax.ShapeDtypeStruct((n, 1), x.dtype),
        grid_spec=pltpu.PrefetchScalarGridSpec(
            num_scalar_prefetch=0,
            grid=(pl.cdiv(n, tm_), dp // tk_),
            in_specs=[
                pl.BlockSpec((tm_, tk_), lambda i, k: (i, k)),
                pl.BlockSpec((1, tk_), lambda i, k: (0, k)),
                pl.BlockSpec(memory_space=pltpu.MemorySpace.SMEM),
            ],
            out_specs=pl.BlockSpec((tm_, 1), lambda i, k: (i, 0)),
        ),
        compiler_params=pltpu.CompilerParams(
            dimension_semantics=("parallel", "arbitrary")),
    )(xk, wk, bias.reshape(1))


# ---------------------------------------------------------------------------
# General tiled path: out = x @ W^T + b (blocked MXU matmul)
# ---------------------------------------------------------------------------
def _tiled_linear_kernel(x_ref, w_ref, b_ref, o_ref):
    # x_ref: (tm, tk)  w_ref: (tn, tk)  b_ref: (1, tn)  o_ref: (tm, tn)
    #
    # Output block index (i, j) is constant across the k axis, so o_ref stays
    # VMEM-resident for the whole reduction: accumulate directly into it
    # (output dtype is f32 for this module, so no precision is lost).
    part = jax.lax.dot_general(
        x_ref[...], w_ref[...],
        dimension_numbers=(((1,), (1,)), ((), ())),   # contract native (O, D)
        preferred_element_type=jnp.float32)

    @pl.when(pl.program_id(2) == 0)
    def _():
        o_ref[...] = (part + b_ref[...]).astype(o_ref.dtype)

    @pl.when(pl.program_id(2) > 0)
    def _():
        o_ref[...] += part.astype(o_ref.dtype)


def _tiled_linear(x, weight, bias, *, tm=512, tn=512, tk=512,
                  prefer_full_weight=True):
    n, d = x.shape
    o = weight.shape[0]

    tm_ = min(tm, _round_up(n, 8))
    o128 = _round_up(o, 128)
    d128 = _round_up(d, 128)

    def vmem_est(a, b, c):
        # double-buffered x, W, bias and output blocks, f32
        return 2 * 4 * (a * c + b * c + b + a * b)

    # Full-weight tiling: when the whole (padded) weight comfortably fits in
    # VMEM, take it as a single tile so x streams from HBM exactly once
    # (the j and k grid axes collapse to 1).
    if prefer_full_weight and vmem_est(tm_, o128, d128) <= 12 * (1 << 20):
        tn_, tk_ = o128, d128
    else:
        tn_ = min(tn, o128)
        tk_ = min(tk, d128)

    # Only the K (contraction) dim must be zero padded; M/O boundary blocks
    # produce garbage only in rows/cols the masked writeback discards.
    dp = _round_up(d, tk_)
    xk = x if dp == d else jnp.pad(x, ((0, 0), (0, dp - d)))
    wk = weight if dp == d else jnp.pad(weight, ((0, 0), (0, dp - d)))
    b_row = bias.reshape(1, o)

    grid = (pl.cdiv(n, tm_), pl.cdiv(o, tn_), dp // tk_)
    # Explicit scoped-VMEM limit so >=512 tiles work on v5e/v6e defaults while
    # staying under v7x's 64 MiB physical VMEM.
    vmem_limit = int(min(max(32 << 20, 2 * vmem_est(tm_, tn_, tk_)), 56 << 20))

    return pl.pallas_call(
        _tiled_linear_kernel,
        out_shape=jax.ShapeDtypeStruct((n, o), x.dtype),
        grid_spec=pltpu.PrefetchScalarGridSpec(
            num_scalar_prefetch=0,
            grid=grid,
            in_specs=[
                pl.BlockSpec((tm_, tk_), lambda i, j, k: (i, k)),
                pl.BlockSpec((tn_, tk_), lambda i, j, k: (j, k)),
                pl.BlockSpec((1, tn_), lambda i, j, k: (0, j)),
            ],
            out_specs=pl.BlockSpec((tm_, tn_), lambda i, j, k: (i, j)),
        ),
        compiler_params=pltpu.CompilerParams(
            dimension_semantics=("parallel", "parallel", "arbitrary"),
            vmem_limit_bytes=vmem_limit),
    )(xk, wk, b_row)


# ---------------------------------------------------------------------------
# Dispatch (LRModel.forward)
# ---------------------------------------------------------------------------
def _linear_forward(x, weight, bias):
    """x: (N, D) f32, weight: (O, D) f32 (PyTorch layout), bias: (O,) f32."""
    n, d = x.shape
    o = weight.shape[0]
    if d == 1 and o == 1:
        return _scalar_linear(x, weight, bias)
    if d == 1:
        return _d1_linear(x, weight, bias)
    if o == 1:
        return _o1_linear(x, weight, bias)
    return _tiled_linear(x, weight, bias)


linear_forward = jax.jit(_linear_forward)


if __name__ == "__main__":
    key = jax.random.PRNGKey(0)
    (kw, kb, kx2, kw2, kb2, kx3, kw3, kb3, kx4, kw4, kb4) = jax.random.split(key, 11)
    HI = jax.lax.Precision.HIGHEST  # accurate references

    # --- chp1 toy: LRModel(input_dim=1, output_dim=1), x = [0..10] ----------
    input_dim, output_dim, n_samples = 1, 1, 11
    bound = 1.0 / (input_dim ** 0.5)
    weight = jax.random.uniform(kw, (output_dim, input_dim), jnp.float32,
                                minval=-bound, maxval=bound)
    bias = jax.random.uniform(kb, (output_dim,), jnp.float32,
                              minval=-bound, maxval=bound)
    x = jnp.arange(n_samples, dtype=jnp.float32).reshape(n_samples, input_dim)

    out = jax.block_until_ready(linear_forward(x, weight, bias))
    ref = jnp.matmul(x, weight.T, precision=HI) + bias
    assert out.shape == (n_samples, output_dim)
    assert jnp.allclose(out, ref, atol=1e-5, rtol=1e-5)

    # --- general tiled MXU path (full-weight tile, single k step) -----------
    n2, d2, o2 = 48, 300, 200
    x2 = jax.random.normal(kx2, (n2, d2), jnp.float32)
    bound2 = 1.0 / (d2 ** 0.5)
    w2 = jax.random.uniform(kw2, (o2, d2), jnp.float32, minval=-bound2, maxval=bound2)
    b2 = jax.random.uniform(kb2, (o2,), jnp.float32, minval=-bound2, maxval=bound2)

    out2 = jax.block_until_ready(linear_forward(x2, w2, b2))
    ref2 = jnp.matmul(x2, w2.T, precision=HI) + b2
    assert out2.shape == (n2, o2)
    assert jnp.allclose(out2, ref2, atol=2e-2, rtol=2e-2)

    # --- same problem through the multi-tile j/k grid (accumulation path) ---
    out2b = jax.block_until_ready(
        _tiled_linear(x2, w2, b2, tn=128, tk=128, prefer_full_weight=False))
    assert jnp.allclose(out2b, ref2, atol=2e-2, rtol=2e-2)

    # --- degenerate VPU paths ------------------------------------------------
    n3, o3 = 40, 9                      # D == 1, O > 1
    x3 = jax.random.normal(kx3, (n3, 1), jnp.float32)
    w3 = jax.random.normal(kw3, (o3, 1), jnp.float32)
    b3 = jax.random.normal(kb3, (o3,), jnp.float32)
    out3 = jax.block_until_ready(linear_forward(x3, w3, b3))
    ref3 = jnp.matmul(x3, w3.T, precision=HI) + b3
    assert jnp.allclose(out3, ref3, atol=1e-5, rtol=1e-5)

    n4, d4 = 40, 200                    # O == 1, D > 1
    bound4 = 1.0 / (d4 ** 0.5)
    x4 = jax.random.normal(kx4, (n4, d4), jnp.float32)
    w4 = jax.random.uniform(kw4, (1, d4), jnp.float32, minval=-bound4, maxval=bound4)
    b4 = jax.random.uniform(kb4, (1,), jnp.float32, minval=-bound4, maxval=bound4)
    out4 = jax.block_until_ready(linear_forward(x4, w4, b4))
    ref4 = jnp.matmul(x4, w4.T, precision=HI) + b4
    assert jnp.allclose(out4, ref4, atol=1e-3, rtol=1e-3)

    print("KERNEL_OK")
</pallas_src>

<mosaic_0001>
module attributes {stable_mosaic.version = 11 : i64} {
  func.func @_scalar_linear_kernel(%arg0: i32, %arg1: memref<8x128xf32, #tpu.memory_space<vmem>>, %arg2: memref<1xf32, #tpu.memory_space<smem>>, %arg3: memref<1xf32, #tpu.memory_space<smem>>, %arg4: memref<8x128xf32, #tpu.memory_space<vmem>>) attributes {dimension_semantics = [#tpu.dimension_semantics<parallel>], iteration_bounds = array<i64: 1>, scalar_prefetch = 0 : i64, scratch_operands = 0 : i64, tpu.core_type = #tpu.core_type<tc>, window_params = [{transform_indices = @transform_0, window_bounds = array<i64: 8, 128>}, {transform_indices = @transform_1, window_bounds = array<i64: 1>}, {transform_indices = @transform_2, window_bounds = array<i64: 1>}, {transform_indices = @transform_3, window_bounds = array<i64: 8, 128>}]} {
    %c0 = arith.constant 0 : index
    %c0_0 = arith.constant 0 : index
    %0 = vector.load %arg1[%c0, %c0_0] : memref<8x128xf32, #tpu.memory_space<vmem>>, vector<8x128xf32>
    %c0_1 = arith.constant 0 : index
    %1 = memref.load %arg2[%c0_1] : memref<1xf32, #tpu.memory_space<smem>>
    %2 = vector.broadcast %1 : f32 to vector<8x128xf32>
    %3 = arith.mulf %0, %2 : vector<8x128xf32>
    %c0_2 = arith.constant 0 : index
    %4 = memref.load %arg3[%c0_2] : memref<1xf32, #tpu.memory_space<smem>>
    %5 = vector.broadcast %4 : f32 to vector<8x128xf32>
    %6 = arith.addf %3, %5 : vector<8x128xf32>
    %c0_3 = arith.constant 0 : index
    %c0_4 = arith.constant 0 : index
    %7 = vector.load %arg4[%c0_3, %c0_4] : memref<8x128xf32, #tpu.memory_space<vmem>>, vector<8x128xf32>
    tpu.vector_store %arg4[%c0_3, %c0_4], %6 {strides = array<i32>} : memref<8x128xf32, #tpu.memory_space<vmem>>, vector<8x128xf32>,
    return
  }
  func.func @transform_0(%arg0: i32) -> (i32, i32) {
    %c0_i32 = arith.constant 0 : i32
    %c0_i32_0 = arith.constant 0 : i32
    return %arg0, %c0_i32 : i32, i32
  }
  func.func @transform_1(%arg0: i32) -> i32 {
    %c0_i32 = arith.constant 0 : i32
    %c0_i32_0 = arith.constant 0 : i32
    return %c0_i32 : i32
  }
  func.func @transform_2(%arg0: i32) -> i32 {
    %c0_i32 = arith.constant 0 : i32
    %c0_i32_0 = arith.constant 0 : i32
    return %c0_i32 : i32
  }
  func.func @transform_3(%arg0: i32) -> (i32, i32) {
    %c0_i32 = arith.constant 0 : i32
    %c0_i32_0 = arith.constant 0 : i32
    return %arg0, %c0_i32 : i32, i32
  }
}

</mosaic_0001>

<bundles_post_ra>
// kernel: _linear_forward.1
= control target key start
LH: loop header
LB: loop body
LE: loop exit
PB: predicated region body
PF: predicated region fallthrough
CT: control target
= control target key end

     0   :  { %s60_s0 = inlined_call_operand.vmem [shape: f32[8,128], index: 0, kind: input, shape index: {}]   ;;  %s61_s1 = inlined_call_operand.<no memory space> [shape: f32[1], index: 1, kind: input, shape index: {}]   ;;  %s62_s2 = inlined_call_operand.<no memory space> [shape: f32[1], index: 2, kind: input, shape index: {}]   ;;  %s63_s3 = inlined_call_operand.vmem [shape: f32[8,128], index: 3, kind: output, shape index: {}]  }
   0x1   :  { %v16_v0 = vld [vmem:[%s60_s0] sm:$0xff]  ;;  %v18_v1 = vstv %s61_s1  ;;  %v21_v2 = vstv %s62_s2 }
   0x2   :  { %v19_v3 = vmul.f32 %v18_v1, %v16_v0 }
   0x4   :  { %v22_v4 = vadd.f32 %v21_v2, %v19_v3 }
   0x6   :  { %23 = vst [vmem:[%s63_s3] sm:$0xff] %v22_v4 }

</bundles_post_ra>
